<compile_context>
chip_gen: v7x
topology: tpu7x:2x2x1
jax: 0.10.0
libtpu: 0.0.40
codegen_flags: <defaults>
</compile_context>

<pallas_src>
import functools
import math

import jax
import jax.numpy as jnp
import numpy as np
from jax.experimental import pallas as pl
from jax.experimental.pallas import tpu as pltpu


def _build_pe_table(max_seq_len: int, embed_dim: int) -> jnp.ndarray:
    """Reproduce the exact PyTorch __init__ loop (note the asymmetric exponent:
    sin uses 2*i/d at even index i, cos uses 2*(i+1)/d at odd index i+1)."""
    assert embed_dim % 2 == 0, "PositionalEmbedding requires an even embed_dim"
    pe = np.zeros((max_seq_len, embed_dim), dtype=np.float32)
    pos = np.arange(max_seq_len, dtype=np.float64)[:, None]          # (S, 1)
    i_even = np.arange(0, embed_dim, 2, dtype=np.float64)[None, :]   # (1, D/2)
    pe[:, 0::2] = np.sin(pos / 10000.0 ** (2.0 * i_even / embed_dim))
    pe[:, 1::2] = np.cos(pos / 10000.0 ** (2.0 * (i_even + 1.0) / embed_dim))
    return jnp.asarray(pe)  # (max_seq_len, embed_dim), float32


def _pos_embed_kernel(x_ref, pe_ref, o_ref, *, scale):
    # x_ref / o_ref: (TB, TC); pe_ref: (1, TC), broadcast over the row axis.
    o_ref[...] = x_ref[...] * scale + pe_ref[...]


def _choose_tiles(batch: int, cols: int, max_block_elems: int):
    """Pick a (TB, TC) block for the flattened (batch, cols) view obeying the
    TPU (8, 128) block constraints and an approximate per-block element budget
    (~2 MiB fp32 by default, so double-buffered in+out stays under the default
    scoped VMEM limit on all of v5e/v6e/v7x)."""
    SUB, LANE = 8, 128
    tb_min = batch if batch < SUB else SUB          # smallest legal row block

    # Column tile: take the full fused width when a minimal row block of it
    # fits the budget, or when it cannot legally be tiled (not a multiple of
    # 128 -> the block must equal the full dim).
    if tb_min * cols <= max_block_elems or cols % LANE != 0:
        # TODO(synk): if cols is both huge and not a multiple of 128 this block
        # may exceed the scoped-VMEM budget; unrealistic for this module.
        tc = cols
    else:
        tc = max(LANE, (max_block_elems // tb_min) // LANE * LANE)

    # Row tile: grow in multiples of 8 (or take the whole batch) within budget.
    rows_budget = max(tb_min, max_block_elems // tc)
    if rows_budget >= batch:
        tb = batch
    else:
        tb = max(tb_min, (rows_budget // SUB) * SUB)
    return tb, tc


def positional_embedding(x: jnp.ndarray, pe: jnp.ndarray, embed_dim: int,
                         *, max_block_elems: int = 512 * 1024) -> jnp.ndarray:
    """x: (B, S, D) float32; pe: (max_seq_len, D) float32 (precomputed table)."""
    B, S, D = x.shape
    assert D == embed_dim
    scale = math.sqrt(embed_dim)

    cols = S * D
    x2 = x.reshape(B, cols)                 # free row-major reshape (lane-dense)
    pe2 = pe[:S, :].reshape(1, cols)        # tiny one-time slice, outside hot loop

    tb, tc = _choose_tiles(B, cols, max_block_elems)
    num_b = pl.cdiv(B, tb)
    num_c = pl.cdiv(cols, tc)

    kernel = functools.partial(_pos_embed_kernel, scale=scale)

    if num_c == 1:
        # Single column tile: 1-D grid over row tiles; pe index is constant so
        # it is fetched into VMEM exactly once and stays resident.
        grid = (num_b,)
        in_specs = [
            pl.BlockSpec((tb, tc), lambda b: (b, 0)),
            pl.BlockSpec((1, tc), lambda b: (0, 0)),
        ]
        out_specs = pl.BlockSpec((tb, tc), lambda b: (b, 0))
        dims = ("parallel",)
    else:
        # Column tiles on the OUTER axis so the pe tile index is constant over
        # the inner row sweep (fetched once per column tile, not per step).
        grid = (num_c, num_b)
        in_specs = [
            pl.BlockSpec((tb, tc), lambda c, b: (b, c)),
            pl.BlockSpec((1, tc), lambda c, b: (0, c)),
        ]
        out_specs = pl.BlockSpec((tb, tc), lambda c, b: (b, c))
        dims = ("parallel", "parallel")

    itemsize = np.dtype(x.dtype).itemsize
    out2 = pl.pallas_call(
        kernel,
        out_shape=jax.ShapeDtypeStruct((B, cols), x.dtype),
        grid_spec=pl.GridSpec(grid=grid, in_specs=in_specs, out_specs=out_specs),
        compiler_params=pltpu.CompilerParams(dimension_semantics=dims),
        cost_estimate=pl.CostEstimate(
            flops=2 * B * cols,
            transcendentals=0,
            bytes_accessed=(2 * B * cols + cols) * itemsize,
        ),
    )(x2, pe2)
    return out2.reshape(B, S, D)


if __name__ == "__main__":
    # --- Test 1: module-sized shapes (single-tile, 1-D grid path) -----------
    batch, max_seq_len, seq_len, embed_dim = 2, 16, 8, 32
    key = jax.random.PRNGKey(0)
    x = jax.random.normal(key, (batch, seq_len, embed_dim), dtype=jnp.float32)
    pe = _build_pe_table(max_seq_len, embed_dim)

    out = jax.block_until_ready(positional_embedding(x, pe, embed_dim))
    ref = x * math.sqrt(embed_dim) + pe[None, :seq_len, :]
    np.testing.assert_allclose(np.asarray(out), np.asarray(ref),
                               rtol=1e-6, atol=1e-6)

    # --- Test 2: force the tiled 2-D grid path (rows + fused columns) -------
    b2, s2, d2 = 16, 8, 128                     # cols = 1024
    x_big = jax.random.normal(jax.random.PRNGKey(0), (b2, s2, d2),
                              dtype=jnp.float32)
    pe_big = _build_pe_table(s2, d2)
    out_big = jax.block_until_ready(
        positional_embedding(x_big, pe_big, d2, max_block_elems=2048))
    ref_big = x_big * math.sqrt(d2) + pe_big[None, :s2, :]
    np.testing.assert_allclose(np.asarray(out_big), np.asarray(ref_big),
                               rtol=1e-6, atol=1e-6)

    print("KERNEL_OK")
</pallas_src>

<mosaic_0001>
module attributes {stable_mosaic.version = 11 : i64} {
  func.func @_pos_embed_kernel(%arg0: i32, %arg1: memref<2x256xf32, #tpu.memory_space<vmem>>, %arg2: memref<1x256xf32, #tpu.memory_space<vmem>>, %arg3: memref<2x256xf32, #tpu.memory_space<vmem>>) attributes {dimension_semantics = [#tpu.dimension_semantics<parallel>], iteration_bounds = array<i64: 1>, scalar_prefetch = 0 : i64, scratch_operands = 0 : i64, tpu.core_type = #tpu.core_type<tc>, window_params = [{transform_indices = @transform_0, window_bounds = array<i64: 2, 256>}, {pipeline_mode = #tpu.pipeline_mode<synchronous>, transform_indices = @transform_1, window_bounds = array<i64: 1, 256>}, {transform_indices = @transform_2, window_bounds = array<i64: 2, 256>}]} {
    %c0 = arith.constant 0 : index
    %c0_0 = arith.constant 0 : index
    %0 = vector.load %arg1[%c0, %c0_0] : memref<2x256xf32, #tpu.memory_space<vmem>>, vector<2x256xf32>
    %cst = arith.constant 5.65685415 : f32
    %1 = vector.broadcast %cst : f32 to vector<2x256xf32>
    %2 = arith.mulf %0, %1 : vector<2x256xf32>
    %c0_1 = arith.constant 0 : index
    %c0_2 = arith.constant 0 : index
    %3 = vector.load %arg2[%c0_1, %c0_2] : memref<1x256xf32, #tpu.memory_space<vmem>>, vector<1x256xf32>
    %4 = vector.broadcast %3 : vector<1x256xf32> to vector<2x256xf32>
    %5 = arith.addf %2, %4 : vector<2x256xf32>
    %c0_3 = arith.constant 0 : index
    %c0_4 = arith.constant 0 : index
    %6 = vector.load %arg3[%c0_3, %c0_4] : memref<2x256xf32, #tpu.memory_space<vmem>>, vector<2x256xf32>
    tpu.vector_store %arg3[%c0_3, %c0_4], %5 {strides = array<i32>} : memref<2x256xf32, #tpu.memory_space<vmem>>, vector<2x256xf32>,
    return
  }
  func.func @transform_0(%arg0: i32) -> (i32, i32) {
    %c0_i32 = arith.constant 0 : i32
    %c0_i32_0 = arith.constant 0 : i32
    return %arg0, %c0_i32 : i32, i32
  }
  func.func @transform_1(%arg0: i32) -> (i32, i32) {
    %c0_i32 = arith.constant 0 : i32
    %c0_i32_0 = arith.constant 0 : i32
    %c0_i32_1 = arith.constant 0 : i32
    return %c0_i32, %c0_i32_0 : i32, i32
  }
  func.func @transform_2(%arg0: i32) -> (i32, i32) {
    %c0_i32 = arith.constant 0 : i32
    %c0_i32_0 = arith.constant 0 : i32
    return %arg0, %c0_i32 : i32, i32
  }
}

</mosaic_0001>

<bundles_post_ra>
// kernel: tpu_custom_call.1
= control target key start
LH: loop header
LB: loop body
LE: loop exit
PB: predicated region body
PF: predicated region fallthrough
CT: control target
= control target key end

     0   :  { %7 = vsyncpa [#allocation3], 0  ;;  %s158_s0 = inlined_call_operand.hbm [shape: f32[2,256], index: 0, kind: input, shape index: {}]   ;;  %s159_s1 = inlined_call_operand.vmem [shape: f32[1,256], index: 1, kind: input, shape index: {}]   ;;  %s160_s2 = inlined_call_operand.hbm [shape: f32[2,256], index: 2, kind: output, shape index: {}]  }
   0x1   :  { %8 = vsyncpa [#allocation4], 0  ;;  %s113_s9 = smov [#allocation2]   ;;  %s65_s13 = scalar_lea.hbm %s158_s0, 64 }
   0x2   :  { %s15_s10 = sshll.u32 %s113_s9, 4  ;;  %p66_p0 = scmp.ne.s32.totalorder %s158_s0, %s65_s13  ;;  %s16_s10 = int_to_ptr.vmem [resolvable:$true] %s15_s10 }
   0x3   :  { %p69_p1 = scmp.lt.u32.totalorder %s65_s13, %s158_s0 }
   0x5   :  { %p71_p2 = pnand %p69_p1, %p66_p0 }
   0x7   :  { %74 = shalt.err (!%p71_p2)
}
   0x8   :  { %s75_s18 = scalar_lea.vmem %s16_s10, 64  ;;  %p80_p4 = scmp.lt.s32.totalorder %s16_s10, %s16_s10 }
   0x9   :  { %p76_p3 = scmp.ne.s32.totalorder %s16_s10, %s75_s18  ;;  %p81_p5 = scmp.lt.s32.totalorder %s75_s18, %s75_s18 }
   0xb   :  { %p82_p6 = por %p81_p5, %p80_p4 }
   0xd   :  { %p83_p7 = pnand %p82_p6, %p76_p3 }
   0xf   :  { %86 = shalt.err (!%p83_p7)
}
  0x10   :  { %18 = dma.hbm_to_vmem [thread:$0]  %s158_s0, 64, %s16_s10, [#allocation3]  }
  0x11   :  { %109 = dma.done.wait [#allocation3], 64  }
  0x12   :  { %110 = vsyncadd [#allocation3], 4294967232  ;;  %v28_v0 = vlaneseq  ;;  %v114_v1 = vmov 1983009808   ;;  %v24_v7 = vld [vmem:[#allocation2] sm:$0xf] }
  0x13   :  { %v38_v2 = vunpack.c.l.s4 %v114_v1  ;;  %v26_v8 = vld [vmem:[%s159_s1] sm:$0x3]  ;;  %v25_v12 = vmul.f32 5.656854, %v24_v7  ;;  %s115_s0 = smov [#allocation5]  }
  0x14   :  { %v29_v3 = vshrl.u32 %v28_v0, 7  ;;  %s53_s23 = sshll.u32 %s115_s0, 4  ;;  %s54_s23 = int_to_ptr.vmem [resolvable:$true] %s53_s23 }
  0x15   :  { %v39_v6 = vunpack.c.0.s8 %v38_v2  ;;  %s87_s24 = scalar_lea.vmem %s54_s23, 64  ;;  %p92_p9 = scmp.lt.s32.totalorder %s54_s23, %s54_s23 }
  0x16   :  { %v30_v4 = vsub.s32 0, %v29_v3  ;;  %v34_v5 = vsub.s32 1, %v29_v3  ;;  %p88_p8 = scmp.ne.s32.totalorder %s54_s23, %s87_s24  ;;  %p93_p10 = scmp.lt.s32.totalorder %s87_s24, %s87_s24 }
  0x17   :  { %v42_v11 = vsub.s32 %v39_v6, %v29_v3 }
  0x18   :  { %v31_v9 = vrot.slane %v26_v8, %v30_v4  ;;  %v35_v10 = vrot.slane %v26_v8, %v34_v5  ;;  %p94_p11 = por %p93_p10, %p92_p9 }
  0x1a   :  { %v36_v13 = vcombine.low %v31_v9, %v35_v10  ;;  %p95_p12 = pnand %p94_p11, %p88_p8 }
  0x1c   :  { %v43_v14 = vrot.slane %v36_v13, %v42_v11 }
  0x1e   :  { %v45_v15 = vadd.f32 %v43_v14, %v25_v12 }
  0x20   :  { %46 = vst [vmem:[#allocation5] sm:$0xf] %v45_v15 }
  0x21   :  { %98 = shalt.err (!%p95_p12)
}
  0x22   :  { %s99_s26 = scalar_lea.hbm %s160_s2, 64 }
  0x23   :  { %p100_p13 = scmp.ne.s32.totalorder %s160_s2, %s99_s26  ;;  %p103_p0 = scmp.lt.u32.totalorder %s99_s26, %s160_s2 }
  0x25   :  { %p105_p1 = pnand %p103_p0, %p100_p13 }
  0x27   :  { %108 = shalt.err (!%p105_p1)
}
  0x28   :  { %56 = dma.vmem_to_hbm [thread:$0]  %s54_s23, 64, %s160_s2, [#allocation4]  }
  0x29   :  { %111 = dma.done.wait [#allocation4], 64  }
  0x2a   :  { %112 = vsyncadd [#allocation4], 4294967232 }
  0x2b   :  { %60 = vsyncpa [#allocation3], 1 }
  0x2c   :  { %61 = vsyncpa [#allocation4], 1 }

</bundles_post_ra>
